<compile_context>
chip_gen: v5e
topology: v5e:2x2
jax: 0.10.0
libtpu: 0.0.40
codegen_flags: <defaults>
</compile_context>

<pallas_src>
import jax
import jax.numpy as jnp
from jax.experimental import pallas as pl
from jax.experimental.pallas import tpu as pltpu


def _group_salient_kernel(x_ref, scale_ref, shift_ref, o_ref):
    # x block: (UB, Cg, HW)  — Cg on sublanes, full (unpadded) HW on lanes.
    # NOTE: all reductions are strictly per-unit (axes 1-2); they never cross
    # the leading UB axis, so a partial trailing unit-block (units % UB != 0)
    # only produces garbage in rows whose output store is masked anyway.
    xf = x_ref[...].astype(jnp.float32)                      # (UB, Cg, HW)

    # Folded-sum formulation: the 1/(Cg*HW) factor is folded into `scale` by
    # the wrapper, so both reductions are plain sums.
    gap = jnp.sum(xf, axis=2, keepdims=True)                 # (UB, Cg, 1)
    s = jnp.sum(gap * xf, axis=1, keepdims=True)             # (UB, 1, HW)
    # (kept as mul+sublane-reduce rather than an MXU dot_general: the thin
    #  (1,Cg)@(Cg,HW) batched contraction is a lowering risk and the kernel is
    #  HBM-bound; the f32 temp is accounted for in the VMEM sizing instead.)

    # eval-mode BatchNorm2d folded into a per-unit affine, then sigmoid (EUP).
    sw = jax.nn.sigmoid(s * scale_ref[...] + shift_ref[...])  # (UB, 1, HW) f32

    # Re-weighting pass in the native dtype; xf's live range ends above.
    o_ref[...] = (sw.astype(o_ref.dtype) * x_ref[...]).astype(o_ref.dtype)


def _vmem_capacity_bytes():
    try:
        return int(pltpu.get_tpu_info().vmem_capacity_bytes)
    except Exception:
        return 128 * 1024 * 1024


def group_salient_block(x, gamma, beta, running_mean, running_var,
                        channels_per_map=32, eps=1e-5):
    n, c, h, w = x.shape
    assert channels_per_map > c or c % channels_per_map == 0, (
        "in_planes must be a multiple of channels_per_map (or smaller than it)")
    groups = c // channels_per_map if c // channels_per_map > 0 else 1
    assert c % groups == 0
    cg = c // groups
    hw = h * w
    units = n * groups

    # (N, C, H, W) -> (N*G, Cg, HW): contiguous, free reshape (no pad / crop).
    x3 = x.reshape(units, cg, hw)

    # Fold eval-mode BN and both mean divisors into a per-group affine.
    inv_std = 1.0 / jnp.sqrt(running_var.astype(jnp.float32) + eps)
    g32 = gamma.astype(jnp.float32)
    scale_g = g32 * inv_std / float(cg * hw)                                 # (G,)
    shift_g = (beta.astype(jnp.float32)
               - running_mean.astype(jnp.float32) * g32 * inv_std)          # (G,)
    # Per-(sample, group) copies, ordered to match the (N*G) unit flattening.
    scale_u = jnp.tile(scale_g, n).reshape(units, 1, 1)
    shift_u = jnp.tile(shift_g, n).reshape(units, 1, 1)

    # --- block sizing from the true VMEM working set, generation aware ------
    itemsize = jnp.dtype(x.dtype).itemsize
    hw_lanes = ((hw + 127) // 128) * 128          # physical lane padding
    cg_sub = ((cg + 7) // 8) * 8                  # physical sublane padding
    native_unit = cg_sub * hw_lanes * itemsize    # one (Cg,HW) slab, native dtype
    f32_unit = cg_sub * hw_lanes * 4              # one slab worth of f32 temps
    # 2x input buffers + 2x output buffers (native) + ~3 f32 block temps
    # (x_f32, gap*x product, re-weight pass).
    ws_per_unit = 4 * native_unit + 3 * f32_unit

    vmem_cap = _vmem_capacity_bytes()
    if vmem_cap <= 64 * 1024 * 1024:              # v7x: 64 MiB / TensorCore
        ws_budget, vmem_limit = 32 << 20, 44 << 20
    else:                                         # v5e / v6e: 128 MiB
        ws_budget, vmem_limit = 60 << 20, 80 << 20

    ub = max(1, min(units, ws_budget // max(1, ws_per_unit)))
    if units >= 2:
        # keep >=2 grid steps so megacore / v7x's two TensorCores both get work
        ub = min(ub, -(-units // 2))
    if ws_per_unit > ws_budget:
        # TODO(synk): for very large feature maps (a single (Cg,HW) slab over
        # budget, e.g. 256x256 f32 on v7x) chunk HW inside the kernel with a
        # two-pass emit_pipeline instead of just raising the scoped limit.
        vmem_limit = min(max(vmem_limit, ws_per_unit + (8 << 20)),
                         max(vmem_cap - (8 << 20), ws_per_unit))

    grid = (pl.cdiv(units, ub),)

    out = pl.pallas_call(
        _group_salient_kernel,
        out_shape=jax.ShapeDtypeStruct((units, cg, hw), x.dtype),
        grid=grid,
        in_specs=[
            pl.BlockSpec((ub, cg, hw), lambda i: (i, 0, 0)),
            pl.BlockSpec((ub, 1, 1), lambda i: (i, 0, 0)),   # scale (per unit)
            pl.BlockSpec((ub, 1, 1), lambda i: (i, 0, 0)),   # shift (per unit)
        ],
        out_specs=pl.BlockSpec((ub, cg, hw), lambda i: (i, 0, 0)),
        compiler_params=pltpu.CompilerParams(
            dimension_semantics=("parallel",),
            vmem_limit_bytes=int(vmem_limit)),
    )(x3, scale_u, shift_u)

    return out.reshape(n, c, h, w)


def _reference(x, gamma, beta, running_mean, running_var,
               channels_per_map=32, eps=1e-5):
    # plain-JAX mirror of the PyTorch forward (eval-mode BN), f32 math
    n, c, h, w = x.shape
    g = c // channels_per_map if c // channels_per_map > 0 else 1
    cg = c // g
    xr = x.astype(jnp.float32).reshape(n, g, cg, h, w)
    gap = jnp.mean(xr, axis=(3, 4), keepdims=True)           # (n,g,cg,1,1)
    ca = jnp.mean(gap * xr, axis=2)                           # (n,g,h,w)
    bn = (ca - running_mean[None, :, None, None]) / jnp.sqrt(
        running_var[None, :, None, None] + eps)
    bn = bn * gamma[None, :, None, None] + beta[None, :, None, None]
    sw = jax.nn.sigmoid(bn)[:, :, None, :, :]                 # (n,g,1,h,w)
    return (sw * xr).reshape(n, c, h, w)


if __name__ == "__main__":
    key = jax.random.PRNGKey(0)
    N, C, H, W = 2, 64, 16, 16          # in_planes=64, channels_per_map=32 -> groups=2
    x = jax.random.normal(key, (N, C, H, W), dtype=jnp.float32)

    groups = C // 32
    # BatchNorm2d default parameters (deterministic, no checkpoint)
    gamma = jnp.ones((groups,), jnp.float32)
    beta = jnp.zeros((groups,), jnp.float32)
    running_mean = jnp.zeros((groups,), jnp.float32)
    running_var = jnp.ones((groups,), jnp.float32)

    # 1) f32 path, lane-aligned spatial size
    out = group_salient_block(x, gamma, beta, running_mean, running_var)
    out = jax.block_until_ready(out)
    ref = _reference(x, gamma, beta, running_mean, running_var)
    assert out.shape == (N, C, H, W)
    assert jnp.allclose(out, ref, atol=1e-5, rtol=1e-5), "f32 mismatch vs reference"

    # 2) bf16 path (native-dtype DMA + native-dtype re-weighting pass)
    x_bf = x.astype(jnp.bfloat16)
    out_bf = group_salient_block(x_bf, gamma, beta, running_mean, running_var)
    out_bf = jax.block_until_ready(out_bf)
    ref_bf = _reference(x_bf, gamma, beta, running_mean, running_var)
    assert out_bf.dtype == jnp.bfloat16
    assert jnp.allclose(out_bf.astype(jnp.float32), ref_bf, atol=3e-2, rtol=3e-2), \
        "bf16 mismatch vs reference"

    # 3) non-128-multiple spatial size (no pad/crop anymore: exercises the
    #    masked partial lane tile in loads / reductions / stores)
    Hp, Wp = 14, 14
    xp = jax.random.normal(jax.random.PRNGKey(1), (N, C, Hp, Wp), dtype=jnp.float32)
    out_p = group_salient_block(xp, gamma, beta, running_mean, running_var)
    out_p = jax.block_until_ready(out_p)
    ref_p = _reference(xp, gamma, beta, running_mean, running_var)
    assert out_p.shape == (N, C, Hp, Wp)
    assert jnp.allclose(out_p, ref_p, atol=1e-5, rtol=1e-5), "padded mismatch vs reference"

    print("KERNEL_OK")
</pallas_src>

<mosaic_0001>
module attributes {stable_mosaic.version = 11 : i64} {
  func.func @_group_salient_kernel(%arg0: i32, %arg1: memref<2x32x256xf32, #tpu.memory_space<vmem>>, %arg2: memref<2x1x1xf32, #tpu.memory_space<vmem>>, %arg3: memref<2x1x1xf32, #tpu.memory_space<vmem>>, %arg4: memref<2x32x256xf32, #tpu.memory_space<vmem>>) attributes {dimension_semantics = [#tpu.dimension_semantics<parallel>], iteration_bounds = array<i64: 2>, scalar_prefetch = 0 : i64, scratch_operands = 0 : i64, tpu.core_type = #tpu.core_type<tc>, window_params = [{transform_indices = @transform_0, window_bounds = array<i64: 2, 32, 256>}, {transform_indices = @transform_1, window_bounds = array<i64: 2, 1, 1>}, {transform_indices = @transform_2, window_bounds = array<i64: 2, 1, 1>}, {transform_indices = @transform_3, window_bounds = array<i64: 2, 32, 256>}]} {
    %c0 = arith.constant 0 : index
    %c0_0 = arith.constant 0 : index
    %c0_1 = arith.constant 0 : index
    %0 = vector.load %arg1[%c0, %c0_0, %c0_1] : memref<2x32x256xf32, #tpu.memory_space<vmem>>, vector<2x32x256xf32>
    %cst = arith.constant dense<0.000000e+00> : vector<2x32xf32>
    %1 = vector.multi_reduction <add>, %0, %cst [2] : vector<2x32x256xf32> to vector<2x32xf32>
    %2 = vector.shape_cast %1 : vector<2x32xf32> to vector<2x32x1xf32>
    %3 = vector.broadcast %2 : vector<2x32x1xf32> to vector<2x32x256xf32>
    %4 = arith.mulf %3, %0 : vector<2x32x256xf32>
    %cst_2 = arith.constant dense<0.000000e+00> : vector<2x256xf32>
    %5 = vector.multi_reduction <add>, %4, %cst_2 [1] : vector<2x32x256xf32> to vector<2x256xf32>
    %6 = vector.shape_cast %5 : vector<2x256xf32> to vector<2x1x256xf32>
    %c0_3 = arith.constant 0 : index
    %c0_4 = arith.constant 0 : index
    %c0_5 = arith.constant 0 : index
    %7 = vector.load %arg2[%c0_3, %c0_4, %c0_5] : memref<2x1x1xf32, #tpu.memory_space<vmem>>, vector<2x1x1xf32>
    %8 = vector.broadcast %7 : vector<2x1x1xf32> to vector<2x1x256xf32>
    %9 = arith.mulf %6, %8 : vector<2x1x256xf32>
    %c0_6 = arith.constant 0 : index
    %c0_7 = arith.constant 0 : index
    %c0_8 = arith.constant 0 : index
    %10 = vector.load %arg3[%c0_6, %c0_7, %c0_8] : memref<2x1x1xf32, #tpu.memory_space<vmem>>, vector<2x1x1xf32>
    %11 = vector.broadcast %10 : vector<2x1x1xf32> to vector<2x1x256xf32>
    %12 = arith.addf %9, %11 : vector<2x1x256xf32>
    %13 = arith.negf %12 : vector<2x1x256xf32>
    %14 = math.exp %13 : vector<2x1x256xf32>
    %cst_9 = arith.constant 1.000000e+00 : f32
    %15 = vector.broadcast %cst_9 : f32 to vector<2x1x256xf32>
    %16 = arith.addf %15, %14 : vector<2x1x256xf32>
    %17 = arith.divf %15, %16 : vector<2x1x256xf32>
    %c0_10 = arith.constant 0 : index
    %c0_11 = arith.constant 0 : index
    %c0_12 = arith.constant 0 : index
    %18 = vector.load %arg1[%c0_10, %c0_11, %c0_12] : memref<2x32x256xf32, #tpu.memory_space<vmem>>, vector<2x32x256xf32>
    %19 = vector.broadcast %17 : vector<2x1x256xf32> to vector<2x32x256xf32>
    %20 = arith.mulf %19, %18 : vector<2x32x256xf32>
    %c0_13 = arith.constant 0 : index
    %c0_14 = arith.constant 0 : index
    %c0_15 = arith.constant 0 : index
    %21 = vector.load %arg4[%c0_13, %c0_14, %c0_15] : memref<2x32x256xf32, #tpu.memory_space<vmem>>, vector<2x32x256xf32>
    tpu.vector_store %arg4[%c0_13, %c0_14, %c0_15], %20 {strides = array<i32>} : memref<2x32x256xf32, #tpu.memory_space<vmem>>, vector<2x32x256xf32>,
    return
  }
  func.func @transform_0(%arg0: i32) -> (i32, i32, i32) {
    %c0_i32 = arith.constant 0 : i32
    %c0_i32_0 = arith.constant 0 : i32
    %c0_i32_1 = arith.constant 0 : i32
    return %arg0, %c0_i32, %c0_i32_0 : i32, i32, i32
  }
  func.func @transform_1(%arg0: i32) -> (i32, i32, i32) {
    %c0_i32 = arith.constant 0 : i32
    %c0_i32_0 = arith.constant 0 : i32
    %c0_i32_1 = arith.constant 0 : i32
    return %arg0, %c0_i32, %c0_i32_0 : i32, i32, i32
  }
  func.func @transform_2(%arg0: i32) -> (i32, i32, i32) {
    %c0_i32 = arith.constant 0 : i32
    %c0_i32_0 = arith.constant 0 : i32
    %c0_i32_1 = arith.constant 0 : i32
    return %arg0, %c0_i32, %c0_i32_0 : i32, i32, i32
  }
  func.func @transform_3(%arg0: i32) -> (i32, i32, i32) {
    %c0_i32 = arith.constant 0 : i32
    %c0_i32_0 = arith.constant 0 : i32
    %c0_i32_1 = arith.constant 0 : i32
    return %arg0, %c0_i32, %c0_i32_0 : i32, i32, i32
  }
}

</mosaic_0001>

<bundles_post_ra>
// kernel: tpu_custom_call.1
= control target key start
LH: loop header
LB: loop body
LE: loop exit
PB: predicated region body
PF: predicated region fallthrough
CT: control target
= control target key end

     0   :  { %8 = vsyncpa [#allocation3], 0  ;;  %s1078_s0 = inlined_call_operand.hbm [shape: f32[4,32,256], index: 0, kind: input, shape index: {}]   ;;  %s1079_s1 = inlined_call_operand.vmem [shape: f32[4,1,1], index: 1, kind: input, shape index: {}]   ;;  %s1080_s2 = inlined_call_operand.vmem [shape: f32[4,1,1], index: 2, kind: input, shape index: {}]   ;;  %s1081_s3 = inlined_call_operand.hbm [shape: f32[4,32,256], index: 3, kind: output, shape index: {}]  }
   0x1   :  { %10 = vsyncpa [#allocation3 + $0x1], 0 }
   0x2   :  { %11 = vsyncpa [#allocation4], 0 }
   0x3   :  { %13 = vsyncpa [#allocation4 + $0x1], 0  ;;  %s795_s12 = smov 0   ;;  %s797_s13 = smov 0  }
   0x4   :  { %s799_s14 = smov 0   ;;  %s801_s15 = smov 0  }
   0x5 LB: > { %s816_s16 = sadd.s32 4294967295, %s768_s15   ;;  %s576_s17 = sadd.s32 4294967294, %s768_s15   ;;  %s768_s15 = sphi %s801_s15, %s1097_s15   ;;  %s764_s14 = sphi %s799_s14, %s1096_s14   ;;  %s760_s13 = sphi %s797_s13, %s1095_s13   ;;  %s756_s12 = sphi %s795_s12, %s1094_s12  }
   0x6   : > { %s820_s18 = sadd.s32 1, %s768_s15   ;;  %s26_s19 = sadd.s32 1, %s764_s14 }
   0x7   : > { %s23_s20 = ssub.s32 %s768_s15, %s820_s18  ;;  %p33_p0 = scmp.ne.s32.totalorder %s764_s14, %s760_s13 }
   0x8   : > { %p24_p1 = scmp.eq.s32.totalorder %s23_s20, 0  ;;  %p34_p2 = scmp.eq.s32.totalorder %s768_s15, 0 }
   0x9   : > { %p39_p3 = scmp.ne.s32.totalorder %s760_s13, %s756_s12  ;;  %p40_p4 = scmp.eq.s32.totalorder %s816_s16, 0 }
   0xa   : > { %s832_s21 = scalar_select %p24_p1, %s764_s14, %s26_s19  }
   0xb   : > { %p834_p5 = por %p34_p2, %p33_p0  ;;  %p838_p6 = por %p40_p4, %p39_p3 }
   0xc   : > { %p115_p7 = scmp.eq.s32.totalorder %s816_s16, 1  ;;  %p121_p8 = scmp.eq.s32.totalorder %s576_s17, 1 }
   0xd   : > { %p614_p10 = scmp.lt.s32.totalorder %s768_s15, 2  ;;  %s141_s26 = sand.u32 1, %s764_s14  }
   0xe   : > { %p845_p11 = por %p115_p7, %p33_p0  ;;  %p849_p12 = por %p121_p8, %p39_p3 }
   0xf   : > { %s599_s27 = sshll.u32 %s768_s15, 7  ;;  %s579_s28 = sshll.u32 %s141_s26, 7 }
  0x10   : > { %s151_s4 = scalar_lea.hbm %s1078_s0, %s599_s27  ;;  %s145_s6 = scalar_lea.vmem [#allocation2], %s579_s28 }
  0x11   : > { %s152_s5 = sshll.u32 %s151_s4, 4  ;;  %s154_s7 = sshll.u32 %s145_s6, 4  ;;  %s153_s5 = int_to_ptr.hbm [resolvable:$true] %s152_s5  ;;  %s155_s7 = int_to_ptr.vmem [resolvable:$true] %s154_s7 }
  0x12   : > { %p860_p13 = pnand %p614_p10, %p834_p5  ;;  %p583_p0 = scmp.ge.s32.totalorder %s768_s15, 1 }
  0x13   : > { %p178_p1 = scmp.lt.s32.totalorder %s768_s15, 3  ;;  %s142_s9 = scalar_lea.sflag [#allocation3], %s141_s26 }
  0x14   : > { %s672_s10 = sshra.s32 %s153_s5, 4  ;;  %p676_p3 = pneg %p860_p13  ;;  %s673_s10 = int_to_ptr.hbm [resolvable:$true] %s672_s10 }
  0x15   : > { %s674_s11 = scalar_lea.hbm %s673_s10, 128  ;;  %s679_s20 = scalar_lea.hbm %s1078_s0, 256 }
  0x16   : > { %p675_p2 = scmp.ne.s32.totalorder %s673_s10, %s674_s11  ;;  %p680_p5 = scmp.lt.s32.totalorder %s673_s10, %s1078_s0 }
  0x17   : > { %p681_p8 = scmp.lt.s32.totalorder %s679_s20, %s674_s11 }
  0x18   : > { %p677_p4 = pnand %p676_p3, %p675_p2 }
  0x19   : > { %p682_p10 = por %p681_p8, %p680_p5 }
  0x1a   : > { %p678_p7 = pneg %p677_p4 }
  0x1c   : > { %p683_p9 = pnand %p682_p10, %p678_p7 }
  0x1e   : > { %686 = shalt.err (!%p683_p9)
}
  0x1f   : > { %s770_s26 = smov 256   ;;  %s771_s28 = smov 16  }
  0x20   : > { %609 = dma.hbm_to_vmem [thread:$0]  (!%p860_p13), %s153_s5, 2048, %s155_s7, %s142_s9, %s770_s26, %s770_s26, %s771_s28  }
  0x21   : > { %p179_p2 = pnand %p583_p0, %p178_p1 }
  0x22   : > { %s881_s29 = sand.u32 (!%p179_p2), 1, %s760_s13  }
  0x23   : > { %182 = sbr.rel (%p179_p2) target bundleno = 251 (0xfb), region = 32  ;;  %s584_s30 = sshll.u32 (!%p179_p2), %s881_s29, 7 }
  0x24   : > { %s185_s4 = scalar_lea.sflag (!%p179_p2), [#allocation3], %s881_s29  ;;  %s887_s6 = scalar_lea.vmem (!%p179_p2), [#allocation2], %s584_s30 }
  0x28   : > { %747 = dma.done.wait (%p838_p6), %s185_s4, 2048  }
  0x29   : > { %749 = vsyncadd (%p838_p6), %s185_s4, 4294965248  ;;  %v772_v0 = vmov 0   ;;  %v894_v1 = vld [vmem:[%s887_s6 + $0x40] sm:$0xff]  ;;  %v897_v2 = vld [vmem:[%s887_s6 + $0x48] sm:$0xff]  ;;  %s586_s23 = sshll.u32 %s816_s16, 1  ;;  %s1007_s17 = scalar_lea.vmem [#allocation5], %s584_s30 }
  0x2a   : > { %654 = vset.pattern.permute.xlu0 %v772_v0  ;;  %655 = vset.pattern.permute.xlu1 %v772_v0  ;;  %v900_v3 = vld [vmem:[%s887_s6] sm:$0xff]  ;;  %v260_v4 = vadd.f32 %v897_v2, %v894_v1  ;;  %v905_v5 = vld [vmem:[%s887_s6 + $0x8] sm:$0xff]  ;;  %v918_v10 = vld [vmem:[%s887_s6 + $0x50] sm:$0xff]  ;;  %p222_p6 = scmp.lt.s32.totalorder %s586_s23, 3  ;;  %s601_s19 = sshll.u32 %s816_s16, 7 }
  0x2b   : > { %653 = vset.pattern.permute.xlu2 %v772_v0  ;;  %v908_v6 = vld [vmem:[%s887_s6 + $0x20] sm:$0xff]  ;;  %v911_v7 = vld [vmem:[%s887_s6 + $0x28] sm:$0xff]  ;;  %v248_v8 = vadd.f32 %v905_v5, %v900_v3  ;;  %v921_v11 = vld [vmem:[%s887_s6 + $0x58] sm:$0xff]  ;;  %s481_s27 = scalar_lea.hbm %s1081_s3, %s601_s19  ;;  %s482_s16 = sshll.u32 %s1007_s17, 4  ;;  %s483_s16 = int_to_ptr.vmem [resolvable:$true] %s482_s16 }
  0x2c   : > { %v254_v9 = vadd.f32 %v911_v7, %v908_v6  ;;  %261 = vadd.xlane.f32.xlu1 %v260_v4  ;;  %v924_v12 = vld [vmem:[%s887_s6 + $0x10] sm:$0xff]  ;;  %v927_v13 = vld [vmem:[%s887_s6 + $0x18] sm:$0xff]  ;;  %v930_v14 = vld [vmem:[%s887_s6 + $0x60] sm:$0xff]  ;;  %v263_v16 = vadd.f32 %v921_v11, %v918_v10  ;;  %s1099_s23 = smov (!%p222_p6, %s586_s23), 3  ;;  %s484_s26 = sshll.u32 %s481_s27, 4  ;;  %s485_s26 = int_to_ptr.hbm [resolvable:$true] %s484_s26 }
  0x2d   : > { %249 = vadd.xlane.f32.xlu0 %v248_v8  ;;  %v933_v15 = vld [vmem:[%s887_s6 + $0x68] sm:$0xff]  ;;  %v251_v17 = vadd.f32 %v927_v13, %v924_v12  ;;  %v942_v19 = vld [vmem:[%s887_s6 + $0x70] sm:$0xff]  ;;  %v945_v20 = vld [vmem:[%s887_s6 + $0x78] sm:$0xff]  ;;  %s224_s8 = scalar_lea.vmem %s1079_s1, %s1099_s23  ;;  %s229_s11 = scalar_lea.vmem %s1080_s2, %s1099_s23 }
  0x2e   : > { %255 = vadd.xlane.f32.xlu2 %v254_v9  ;;  %v266_v18 = vadd.f32 %v933_v15, %v930_v14  ;;  %v948_v21 = vld [vmem:[%s887_s6 + $0x30] sm:$0xff]  ;;  %v951_v22 = vld [vmem:[%s887_s6 + $0x38] sm:$0xff]  ;;  %v269_v23 = vadd.f32 %v945_v20, %v942_v19  ;;  %v324_v25 = vld [vmem:[%s224_s8] sm:$0x1]  ;;  %s469_s28 = scalar_lea.sflag [#allocation4], %s881_s29  ;;  %s716_s30 = sshra.s32 %s485_s26, 4  ;;  %s717_s30 = int_to_ptr.hbm [resolvable:$true] %s716_s30 }
  0x2f   : > { %v257_v24 = vadd.f32 %v951_v22, %v948_v21  ;;  %v325_v26 = vld [vmem:[%s224_s8 + $0x1] sm:$0x1]  ;;  %v342_v27 = vld [vmem:[%s229_s11] sm:$0x1]  ;;  %s718_s4 = scalar_lea.hbm %s717_s30, 128  ;;  %s722_s5 = scalar_lea.hbm %s1081_s3, 256 }
  0x30   : > { %v343_v28 = vld [vmem:[%s229_s11 + $0x1] sm:$0x1]  ;;  %p719_p9 = scmp.ne.s32.totalorder %s717_s30, %s718_s4  ;;  %p723_p1 = scmp.lt.s32.totalorder %s717_s30, %s1081_s3 }
  0x31   : > { %p724_p3 = scmp.lt.s32.totalorder %s722_s5, %s718_s4 }
  0x32   : > { %p720_p13 = pnand %p719_p9, %p845_p11 }
  0x33   : > { %p725_p4 = por %p724_p3, %p723_p1 }
  0x34   : > { %264 = vadd.xlane.f32.xlu1 %v263_v16  ;;  %p721_p0 = pneg %p720_p13 }
  0x35   : > { %252 = vadd.xlane.f32.xlu0 %v251_v17 }
  0x36   : > { %267 = vadd.xlane.f32.xlu2 %v266_v18  ;;  %p726_p7 = pnand %p725_p4, %p721_p0 }
  0x3c   : > { %270 = vadd.xlane.f32.xlu1 %v269_v23 }
  0x3d   : > { %258 = vadd.xlane.f32.xlu0 %v257_v24 }
  0x4e   : > { %328 = vperm.xlu2 %653, %v324_v25  }
  0x51   : > { %334 = vperm.xlu0 %654, %v325_v26  }
  0x55   : > { %346 = vperm.xlu1 %655, %v342_v27  }
  0x56   : > { %352 = vperm.xlu2 %653, %v343_v28  }
  0x9f   : > { %v262_v29 = vpop.xlane.xlu1 %261 }
  0xa0   : > { %v250_v30 = vpop.xlane.xlu0 %249  ;;  %v280_v39 = vmul.f32 %v262_v29, %v894_v1  ;;  %v281_v40 = vmul.f32 %v262_v29, %v897_v2 }
  0xa1   : > { %v256_v31 = vpop.xlane.xlu2 %255  ;;  %v272_v41 = vmul.f32 %v250_v30, %v900_v3  ;;  %v273_v42 = vmul.f32 %v250_v30, %v905_v5 }
  0xa2   : > { %v276_v47 = vmul.f32 %v256_v31, %v908_v6  ;;  %v277_v48 = vmul.f32 %v256_v31, %v911_v7 }
  0xa7   : > { %v265_v32 = vpop.xlane.xlu1 %264 }
  0xa8   : > { %v282_v33 = vmul.f32 %v265_v32, %v918_v10  ;;  %v283_v34 = vmul.f32 %v265_v32, %v921_v11  ;;  %v253_v35 = vpop.xlane.xlu0 %252 }
  0xa9   : > { %v274_v36 = vmul.f32 %v253_v35, %v924_v12  ;;  %v275_v37 = vmul.f32 %v253_v35, %v927_v13  ;;  %v268_v38 = vpop.xlane.xlu2 %267 }
  0xaa   : > { %v306_v43 = vadd.f32 %v282_v33, %v280_v39  ;;  %v315_v44 = vadd.f32 %v283_v34, %v281_v40  ;;  %v284_v45 = vmul.f32 %v268_v38, %v930_v14  ;;  %v285_v46 = vmul.f32 %v268_v38, %v933_v15 }
  0xab   : > { %v288_v49 = vadd.f32 %v274_v36, %v272_v41  ;;  %v297_v50 = vadd.f32 %v275_v37, %v273_v42 }
  0xac   : > { %v307_v52 = vadd.f32 %v306_v43, %v284_v45  ;;  %v316_v53 = vadd.f32 %v315_v44, %v285_v46 }
  0xad   : > { %v289_v57 = vadd.f32 %v288_v49, %v276_v47  ;;  %v298_v58 = vadd.f32 %v297_v50, %v277_v48 }
  0xaf   : > { %v271_v51 = vpop.xlane.xlu1 %270 }
  0xb0   : > { %v286_v54 = vmul.f32 %v271_v51, %v942_v19  ;;  %v287_v55 = vmul.f32 %v271_v51, %v945_v20  ;;  %v259_v56 = vpop.xlane.xlu0 %258 }
  0xb1   : > { %v278_v59 = vmul.f32 %v259_v56, %v948_v21  ;;  %v279_v60 = vmul.f32 %v259_v56, %v951_v22  ;;  %v329_v29 = vpop.permute.xlu2 %328 }
  0xb2   : > { %v308_v61 = vadd.f32 %v307_v52, %v286_v54  ;;  %v317_v62 = vadd.f32 %v316_v53, %v287_v55  ;;  %v331_v39 = vperm.slane %v329_v29, 0 }
  0xb3   : > { %v290_v63 = vadd.f32 %v289_v57, %v278_v59  ;;  %v299_v0 = vadd.f32 %v298_v58, %v279_v60 }
  0xb4   : > { %v309_v4 = vrot.slane %v308_v61, 4  ;;  %v318_v8 = vrot.slane %v317_v62, 4 }
  0xb5   : > { %v291_v9 = vrot.slane %v290_v63, 4  ;;  %v300_v16 = vrot.slane %v299_v0, 4 }
  0xb6   : > { %v310_v17 = vadd.f32 %v309_v4, %v308_v61  ;;  %v319_v18 = vadd.f32 %v318_v8, %v317_v62 }
  0xb7   : > { %v292_v23 = vadd.f32 %v291_v9, %v290_v63  ;;  %v301_v24 = vadd.f32 %v300_v16, %v299_v0 }
  0xb8   : > { %v311_v25 = vrot.slane %v310_v17, 2  ;;  %v320_v26 = vrot.slane %v319_v18, 2 }
  0xb9   : > { %v293_v27 = vrot.slane %v292_v23, 2  ;;  %v302_v28 = vrot.slane %v301_v24, 2  ;;  %v353_v40 = vpop.permute.xlu2 %352 }
  0xba   : > { %v312_v32 = vadd.f32 %v311_v25, %v310_v17  ;;  %v321_v33 = vadd.f32 %v320_v26, %v319_v18  ;;  %v355_v46 = vperm.slane %v353_v40, 0 }
  0xbb   : > { %v294_v30 = vadd.f32 %v293_v27, %v292_v23  ;;  %v303_v31 = vadd.f32 %v302_v28, %v301_v24 }
  0xbc   : > { %v313_v36 = vrot.slane %v312_v32, 1  ;;  %v322_v37 = vrot.slane %v321_v33, 1 }
  0xbd   : > { %v295_v34 = vrot.slane %v294_v30, 1  ;;  %v304_v35 = vrot.slane %v303_v31, 1 }
  0xbe   : > { %v314_v43 = vadd.f32 %v313_v36, %v312_v32  ;;  %v323_v44 = vadd.f32 %v322_v37, %v321_v33 }
  0xbf   : > { %v296_v38 = vadd.f32 %v295_v34, %v294_v30  ;;  %v305_v42 = vadd.f32 %v304_v35, %v303_v31 }
  0xc1   : > { %v338_v49 = vmul.f32 %v331_v39, %v296_v38  ;;  %v339_v51 = vmul.f32 %v331_v39, %v305_v42 }
  0xc3   : > { %v335_v41 = vpop.permute.xlu0 %334 }
  0xc4   : > { %v337_v45 = vperm.slane %v335_v41, 0 }
  0xc6   : > { %v340_v47 = vmul.f32 %v337_v45, %v314_v43  ;;  %v341_v48 = vmul.f32 %v337_v45, %v323_v44 }
  0xc7   : > { %v347_v50 = vpop.permute.xlu1 %346 }
  0xc8   : > { %v358_v52 = vadd.f32 %v355_v46, %v340_v47  ;;  %v359_v53 = vadd.f32 %v355_v46, %v341_v48  ;;  %v349_v54 = vperm.slane %v347_v50, 0 }
  0xca   : > { %v590_v55 = vmul.f32 -1.442695, %v358_v52  ;;  %v591_v56 = vmul.f32 -1.442695, %v359_v53  ;;  %v356_v57 = vadd.f32 %v349_v54, %v338_v49  ;;  %v357_v58 = vadd.f32 %v349_v54, %v339_v51 }
  0xcc   : > { %656 = vpow2.f32 %v590_v55  ;;  %v588_v59 = vmul.f32 -1.442695, %v356_v57  ;;  %v589_v60 = vmul.f32 -1.442695, %v357_v58 }
  0xcd   : > { %658 = vpow2.f32 %v591_v56 }
  0xce   : > { %660 = vpow2.f32 %v588_v59 }
  0xcf   : > { %662 = vpow2.f32 %v589_v60 }
  0xd2   : > { %v657_v61 = vpop.eup %656 }
  0xd3   : > { %v659_v62 = vpop.eup %658  ;;  %v374_v63 = vadd.f32 1.0, %v657_v61 }
  0xd4   : > { %v661_v0 = vpop.eup %660  ;;  %v375_v4 = vadd.f32 1.0, %v659_v62 }
  0xd5   : > { %v663_v8 = vpop.eup %662  ;;  %664 = vrcp.f32 %v374_v63  ;;  %v372_v9 = vadd.f32 1.0, %v661_v0  ;;  %v415_v24 = vand.u32 2147483647, %v374_v63  ;;  %v417_v25 = vand.u32 2147483648, %v374_v63 }
  0xd6   : > { %666 = vrcp.f32 %v375_v4  ;;  %v980_v16 = vadd.f32 1.0, %v663_v8  ;;  %v430_v28 = vand.u32 2147483647, %v375_v4  ;;  %v432_v29 = vand.u32 2147483648, %v375_v4 }
  0xd7   : > { %668 = vrcp.f32 %v372_v9  ;;  %vm411_vm0 = vweird.f32 %v374_v63  ;;  %vm426_vm1 = vweird.f32 %v375_v4  ;;  %vm983_vm3 = vcmp.eq.f32.partialorder %v415_v24, 8.507059e+37 }
  0xd8   : > { %670 = vrcp.f32 %v980_v16  ;;  %v418_v36 = vor.u32 1.1754944e-38, %v417_v25  ;;  %vm988_vm5 = vcmp.eq.f32.partialorder %v430_v28, 8.507059e+37  ;;  %v433_v41 = vor.u32 1.1754944e-38, %v432_v29 }
  0xd9   : > { %v385_v44 = vand.u32 2147483647, %v372_v9  ;;  %v387_v45 = vand.u32 2147483648, %v372_v9  ;;  %v400_v49 = vand.u32 2147483647, %v980_v16  ;;  %v402_v50 = vand.u32 2147483648, %v980_v16 }
  0xda   : > { %vm381_vm10 = vweird.f32 %v372_v9  ;;  %vm396_vm12 = vweird.f32 %v980_v16 }
  0xdb   : > { %v665_v17 = vpop.eup %664  ;;  %vm386_vm13 = vcmp.eq.f32.partialorder %v385_v44, 8.507059e+37  ;;  %vm401_vm15 = vcmp.eq.f32.partialorder %v400_v49, 8.507059e+37 }
  0xdc   : > { %v667_v18 = vpop.eup %666  ;;  %v407_v23 = vmul.f32 %v665_v17, %v374_v63  ;;  %vm412_vm2 = vweird.f32 %v665_v17 }
  0xdd   : > { %v422_v26 = vmul.f32 %v667_v18, %v375_v4  ;;  %v669_v30 = vpop.eup %668  ;;  %vm427_vm4 = vweird.f32 %v667_v18  ;;  %vm413_vm6 = vmor %vm411_vm0, %vm412_vm2 }
  0xde   : > { %v408_v27 = vsub.f32 1.0, %v407_v23  ;;  %v671_v32 = vpop.eup %670  ;;  %v377_v35 = vmul.f32 %v669_v30, %v372_v9  ;;  %vm428_vm7 = vmor %vm426_vm1, %vm427_vm4  ;;  %vm382_vm8 = vweird.f32 %v669_v30 }
  0xdf   : > { %v423_v31 = vsub.f32 1.0, %v422_v26  ;;  %v392_v38 = vmul.f32 %v671_v32, %v980_v16  ;;  %vm397_vm9 = vweird.f32 %v671_v32  ;;  %vm1010_vm11 = vmor %vm381_vm10, %vm382_vm8 }
  0xe0   : > { %v409_v33 = vmul.f32 %v665_v17, %v408_v27  ;;  %v378_v42 = vsub.f32 1.0, %v377_v35  ;;  %vm398_vm14 = vmor %vm396_vm12, %vm397_vm9 }
  0xe1   : > { %v424_v37 = vmul.f32 %v667_v18, %v423_v31  ;;  %v393_v46 = vsub.f32 1.0, %v392_v38 }
  0xe2   : > { %v410_v39 = vadd.f32 %v665_v17, %v409_v33  ;;  %v379_v48 = vmul.f32 %v669_v30, %v378_v42 }
  0xe3   : > { %v425_v43 = vadd.f32 %v667_v18, %v424_v37  ;;  %v394_v53 = vmul.f32 %v671_v32, %v393_v46 }
  0xe4   : > { %v414_v47 = vsel %vm413_vm6, %v665_v17, %v410_v39  ;;  %v380_v60 = vadd.f32 %v669_v30, %v379_v48 }
  0xe5   : > { %v419_v51 = vsel %vm983_vm3, %v418_v36, %v414_v47  ;;  %v429_v52 = vsel %vm428_vm7, %v667_v18, %v425_v43 }
  0xe6   : > { %v434_v54 = vsel %vm988_vm5, %v433_v41, %v429_v52  ;;  %v444_v55 = vmul.f32 %v419_v51, %v894_v1  ;;  %v446_v56 = vmul.f32 %v419_v51, %v918_v10  ;;  %v448_v59 = vmul.f32 %v419_v51, %v930_v14 }
  0xe7   : > { %v445_v57 = vmul.f32 %v434_v54, %v897_v2  ;;  %v447_v58 = vmul.f32 %v434_v54, %v921_v11  ;;  %v395_v10 = vadd.f32 %v671_v32, %v394_v53  ;;  %v449_v2 = vmul.f32 %v434_v54, %v933_v15 }
  0xe8   : > { %460 = vst [vmem:[%s1007_s17 + $0x40] sm:$0xff] %v444_v55  ;;  %v388_v11 = vor.u32 1.1754944e-38, %v387_v45  ;;  %v403_v14 = vor.u32 1.1754944e-38, %v402_v50  ;;  %v450_v61 = vmul.f32 %v419_v51, %v942_v19  ;;  %v384_v62 = vsel %vm1010_vm11, %v669_v30, %v380_v60 }
  0xe9   : > { %461 = vst [vmem:[%s1007_s17 + $0x48] sm:$0xff] %v445_v57  ;;  %v399_v63 = vsel %vm398_vm14, %v671_v32, %v395_v10  ;;  %v451_v15 = vmul.f32 %v434_v54, %v945_v20 }
  0xea   : > { %462 = vst [vmem:[%s1007_s17 + $0x50] sm:$0xff] %v446_v56  ;;  %v389_v0 = vsel %vm386_vm13, %v388_v11, %v384_v62  ;;  %v404_v4 = vsel %vm401_vm15, %v403_v14, %v399_v63 }
  0xeb   : > { %463 = vst [vmem:[%s1007_s17 + $0x58] sm:$0xff] %v447_v58  ;;  %v436_v19 = vmul.f32 %v389_v0, %v900_v3  ;;  %v437_v8 = vmul.f32 %v404_v4, %v905_v5  ;;  %v438_v9 = vmul.f32 %v389_v0, %v924_v12  ;;  %v439_v20 = vmul.f32 %v404_v4, %v927_v13 }
  0xec   : > { %464 = vst [vmem:[%s1007_s17 + $0x60] sm:$0xff] %v448_v59  ;;  %v440_v3 = vmul.f32 %v389_v0, %v908_v6  ;;  %v441_v5 = vmul.f32 %v404_v4, %v911_v7  ;;  %v442_v12 = vmul.f32 %v389_v0, %v948_v21  ;;  %v443_v16 = vmul.f32 %v404_v4, %v951_v22 }
  0xed   : > { %465 = vst [vmem:[%s1007_s17 + $0x68] sm:$0xff] %v449_v2 }
  0xee   : > { %466 = vst [vmem:[%s1007_s17 + $0x70] sm:$0xff] %v450_v61 }
  0xef   : > { %467 = vst [vmem:[%s1007_s17 + $0x78] sm:$0xff] %v451_v15 }
  0xf0   : > { %452 = vst [vmem:[%s1007_s17] sm:$0xff] %v436_v19 }
  0xf1   : > { %453 = vst [vmem:[%s1007_s17 + $0x8] sm:$0xff] %v437_v8 }
  0xf2   : > { %454 = vst [vmem:[%s1007_s17 + $0x10] sm:$0xff] %v438_v9 }
  0xf3   : > { %455 = vst [vmem:[%s1007_s17 + $0x18] sm:$0xff] %v439_v20 }
  0xf4   : > { %456 = vst [vmem:[%s1007_s17 + $0x20] sm:$0xff] %v440_v3 }
  0xf5   : > { %457 = vst [vmem:[%s1007_s17 + $0x28] sm:$0xff] %v441_v5 }
  0xf6   : > { %458 = vst [vmem:[%s1007_s17 + $0x30] sm:$0xff] %v442_v12 }
  0xf7   : > { %459 = vst [vmem:[%s1007_s17 + $0x38] sm:$0xff] %v443_v16 }
  0xf8   : > { %729 = shalt.err (!%p726_p7)
}
  0xf9   : > { %s773_s29 = smov 256   ;;  %s774_s9 = smov 16  }
  0xfa   : > { %604 = dma.vmem_to_hbm [thread:$0]  (%p845_p11), %s483_s16, 2048, %s485_s26, %s469_s28, %s773_s29, %s773_s29, %s774_s9  }
  0xfb PF: > { %s499_s10 = sand.u32 1, %s756_s12   ;;  %p1093_p5 = scmp.ge.s32.totalorder %s768_s15, 2 }
  0xfc   : > { %s500_s11 = scalar_lea.sflag [#allocation4], %s499_s10 }
  0xfd   : > { %p611_p8 = pnand %p1093_p5, %p849_p12 }
  0xff   : > { %p612_p10 = pneg %p611_p8 }
 0x101   : > { %751 = dma.done.wait (%p612_p10), %s500_s11, 2048  }
 0x102   : > { %753 = vsyncadd (%p612_p10), %s500_s11, 4294965248  ;;  %p16_p2 = scmp.ge.s32.totalorder %s820_s18, 4   ;;  %s1094_s12 = smov %s760_s13 }
 0x103   : > { %s1095_s13 = smov %s764_s14  ;;  %s1096_s14 = smov %s832_s21 }
 0x104   : > { %s1097_s15 = smov %s820_s18  ;;  %18 = sbr.rel (!%p16_p2) target bundleno = 5 (0x5), region = 83 }
 0x109   :  { %506 = vsyncpa [#allocation3], 1 }
 0x10a   :  { %508 = vsyncpa [#allocation3 + $0x1], 1 }
 0x10b   :  { %509 = vsyncpa [#allocation4], 1 }
 0x10c   :  { %511 = vsyncpa [#allocation4 + $0x1], 1 }

</bundles_post_ra>
